<compile_context>
chip_gen: v7x
topology: tpu7x:2x2x1
jax: 0.10.0
libtpu: 0.0.40
codegen_flags: <defaults>
</compile_context>

<pallas_src>
import jax
import jax.numpy as jnp
from jax.experimental import pallas as pl
from jax.experimental.pallas import tpu as pltpu

_LANE = 128
_SUB = 8


def _num_tensorcores_per_chip():
    """2 TensorCores per chip on v7x; 1 on v5e/v6e (and anything unknown)."""
    try:
        kind = jax.devices()[0].device_kind.lower()
    except Exception:
        return 1
    return 2 if "v7" in kind else 1


def _make_nan_bce_kernel(block_rows):
    """Kernel with the (static) block row count baked in via closure."""
    folds = block_rows // _SUB

    def kernel(o_ref, t_ref, sum_ref, cnt_ref):
        j = pl.program_id(1)  # streaming step within this split

        @pl.when(j == 0)
        def _init():
            sum_ref[...] = jnp.zeros_like(sum_ref)
            cnt_ref[...] = jnp.zeros_like(cnt_ref)

        x = o_ref[0].astype(jnp.float32)   # (block_rows, 128) logits
        y = t_ref[0].astype(jnp.float32)   # (block_rows, 128) targets (NaN = masked)

        # Single mask: NaN targets cover both real NaNs and wrapper padding.
        valid = jnp.logical_not(jnp.isnan(y))

        # Numerically stable BCE-with-logits:
        #   max(x, 0) - x*y + log1p(exp(-|x|))
        # NaN produced by x*NaN on masked entries is discarded by the select
        # below (select does not propagate NaN from the unselected branch).
        loss = (jnp.maximum(x, 0.0) - x * y
                + jnp.log1p(jnp.exp(-jnp.abs(x))))
        loss = jnp.where(valid, loss, 0.0)

        # Fold (block_rows, 128) -> (8, 128): vreg-wise VPU adds only
        # (reshape regroups whole (8,128) tiles; no layout change), then
        # accumulate into the resident output blocks.
        sum_ref[0] += loss.reshape(folds, _SUB, _LANE).sum(axis=0)
        cnt_ref[0] += valid.astype(jnp.float32).reshape(
            folds, _SUB, _LANE).sum(axis=0)

    return kernel


def nan_bce_with_logits_loss(output, target, *, block_rows=4096, n_splits=None):
    """Masked BCEWithLogitsLoss(mean): ignores entries where target is NaN."""
    o = output.reshape(-1)   # keep incoming dtype (bf16 ok); upcast in-kernel
    t = target.reshape(-1)
    n = o.shape[0]

    cores = _num_tensorcores_per_chip()
    if n_splits is None:
        n_splits = cores

    # Sublane-aligned block rows.
    block_rows = max(_SUB, (block_rows // _SUB) * _SUB)

    # Size the grid so every block is full; pad the flat arrays up to the
    # full-block boundary with NaN targets (masked in-kernel by isnan).
    rows_needed = pl.cdiv(n, _LANE)
    rows_per_split_needed = pl.cdiv(rows_needed, n_splits)
    rows_per_split_needed = max(
        _SUB, pl.cdiv(rows_per_split_needed, _SUB) * _SUB)
    br = min(block_rows, rows_per_split_needed)
    inner_steps = pl.cdiv(rows_per_split_needed, br)
    rows_per_split = inner_steps * br
    padded = n_splits * rows_per_split * _LANE
    pad = padded - n
    if pad:
        o = jnp.pad(o, (0, pad))                                 # value is masked off
        t = jnp.pad(t, (0, pad), constant_values=float("nan"))   # NaN => ignored

    o3 = o.reshape(n_splits, rows_per_split, _LANE)
    t3 = t.reshape(n_splits, rows_per_split, _LANE)

    kernel = _make_nan_bce_kernel(br)

    def _call(dim_sems):
        return pl.pallas_call(
            kernel,
            out_shape=(
                jax.ShapeDtypeStruct((n_splits, _SUB, _LANE), jnp.float32),
                jax.ShapeDtypeStruct((n_splits, _SUB, _LANE), jnp.float32),
            ),
            grid_spec=pltpu.PrefetchScalarGridSpec(
                num_scalar_prefetch=0,
                grid=(n_splits, inner_steps),
                in_specs=[
                    pl.BlockSpec((1, br, _LANE), lambda s, j: (s, j, 0)),
                    pl.BlockSpec((1, br, _LANE), lambda s, j: (s, j, 0)),
                ],
                out_specs=[
                    pl.BlockSpec((1, _SUB, _LANE), lambda s, j: (s, 0, 0)),
                    pl.BlockSpec((1, _SUB, _LANE), lambda s, j: (s, 0, 0)),
                ],
            ),
            compiler_params=pltpu.CompilerParams(
                dimension_semantics=dim_sems,
                vmem_limit_bytes=48 << 20),
        )(o3, t3)

    if n_splits > 1 and cores > 1:
        # v7x: shard the split axis across both TensorCores.
        try:
            sums, cnts = _call((pltpu.CORE_PARALLEL, pltpu.ARBITRARY))
        except Exception:
            sums, cnts = _call((pltpu.PARALLEL, pltpu.ARBITRARY))
    elif n_splits > 1:
        sums, cnts = _call((pltpu.PARALLEL, pltpu.ARBITRARY))
    else:
        sums, cnts = _call((pltpu.ARBITRARY, pltpu.ARBITRARY))

    # Mean over valid elements (NaN if no valid element, matching torch's
    # mean over an empty masked_select).
    return jnp.sum(sums) / jnp.sum(cnts)


def _reference(output, target):
    """Pure-JAX reference for sanity checking."""
    o = output.reshape(-1).astype(jnp.float32)
    t = target.reshape(-1).astype(jnp.float32)
    valid = jnp.logical_not(jnp.isnan(t))
    t_safe = jnp.where(valid, t, 0.0)
    loss = (jnp.maximum(o, 0.0) - o * t_safe
            + jnp.log1p(jnp.exp(-jnp.abs(o))))
    loss = jnp.where(valid, loss, 0.0)
    return jnp.sum(loss) / jnp.sum(valid.astype(jnp.float32))


def _make_case(key, shape, nan_p=0.25):
    k_out, k_tgt, k_nan = jax.random.split(key, 3)
    output = jax.random.normal(k_out, shape, dtype=jnp.float32)
    target = jax.random.bernoulli(k_tgt, 0.5, shape).astype(jnp.float32)
    nan_mask = jax.random.bernoulli(k_nan, nan_p, shape)
    target = jnp.where(nan_mask, jnp.nan, target)
    return output, target


if __name__ == "__main__":
    key = jax.random.PRNGKey(0)
    k1, k2, k3 = jax.random.split(key, 3)

    # Case 1: module-sized input (batch=2, D=16), default tiling.
    out1, tgt1 = _make_case(k1, (2, 16))
    loss1 = jax.block_until_ready(nan_bce_with_logits_loss(out1, tgt1))
    ref1 = _reference(out1, tgt1)
    assert jnp.allclose(loss1, ref1, rtol=1e-5, atol=1e-6), (loss1, ref1)

    # Case 2: ragged size exercising a multi-step grid and the NaN-padded
    # tail (block_rows override forces >1 streaming step).
    out2, tgt2 = _make_case(k2, (100, 97))
    loss2 = jax.block_until_ready(
        nan_bce_with_logits_loss(out2, tgt2, block_rows=16))
    ref2 = _reference(out2, tgt2)
    assert jnp.allclose(loss2, ref2, rtol=1e-5, atol=1e-6), (loss2, ref2)

    # Case 3: forced 2-way split (exercises the split axis + wrapper reduce;
    # lands on CORE_PARALLEL only when 2 TensorCores are actually present).
    out3, tgt3 = _make_case(k3, (64, 200))
    loss3 = jax.block_until_ready(
        nan_bce_with_logits_loss(out3, tgt3, block_rows=24, n_splits=2))
    ref3 = _reference(out3, tgt3)
    assert jnp.allclose(loss3, ref3, rtol=1e-5, atol=1e-6), (loss3, ref3)

    print("KERNEL_OK")
</pallas_src>

<mosaic_0001>
module attributes {stable_mosaic.version = 11 : i64} {
  func.func @kernel(%arg0: i32, %arg1: i32, %arg2: memref<1x8x128xf32, #tpu.memory_space<vmem>>, %arg3: memref<1x8x128xf32, #tpu.memory_space<vmem>>, %arg4: memref<1x8x128xf32, #tpu.memory_space<vmem>>, %arg5: memref<1x8x128xf32, #tpu.memory_space<vmem>>) attributes {dimension_semantics = [#tpu.dimension_semantics<arbitrary>, #tpu.dimension_semantics<arbitrary>], iteration_bounds = array<i64: 1, 1>, scalar_prefetch = 0 : i64, scratch_operands = 0 : i64, tpu.core_type = #tpu.core_type<tc>, window_params = [{transform_indices = @transform_0, window_bounds = array<i64: 1, 8, 128>}, {transform_indices = @transform_1, window_bounds = array<i64: 1, 8, 128>}, {transform_indices = @transform_2, window_bounds = array<i64: 1, 8, 128>}, {transform_indices = @transform_3, window_bounds = array<i64: 1, 8, 128>}]} {
    %c0_i32 = arith.constant 0 : i32
    %0 = arith.cmpi eq, %arg1, %c0_i32 : i32
    %1 = arith.extui %0 : i1 to i32
    %c0_i32_0 = arith.constant 0 : i32
    %2 = arith.cmpi ne, %1, %c0_i32_0 : i32
    scf.if %2 {
      %cst_23 = arith.constant 0.000000e+00 : f32
      %39 = vector.broadcast %cst_23 : f32 to vector<1x8x128xf32>
      %c0_24 = arith.constant 0 : index
      %c0_25 = arith.constant 0 : index
      %c0_26 = arith.constant 0 : index
      %40 = vector.load %arg4[%c0_24, %c0_25, %c0_26] : memref<1x8x128xf32, #tpu.memory_space<vmem>>, vector<1x8x128xf32>
      tpu.vector_store %arg4[%c0_24, %c0_25, %c0_26], %39 {strides = array<i32>} : memref<1x8x128xf32, #tpu.memory_space<vmem>>, vector<1x8x128xf32>,
      %cst_27 = arith.constant 0.000000e+00 : f32
      %41 = vector.broadcast %cst_27 : f32 to vector<1x8x128xf32>
      %c0_28 = arith.constant 0 : index
      %c0_29 = arith.constant 0 : index
      %c0_30 = arith.constant 0 : index
      %42 = vector.load %arg5[%c0_28, %c0_29, %c0_30] : memref<1x8x128xf32, #tpu.memory_space<vmem>>, vector<1x8x128xf32>
      tpu.vector_store %arg5[%c0_28, %c0_29, %c0_30], %41 {strides = array<i32>} : memref<1x8x128xf32, #tpu.memory_space<vmem>>, vector<1x8x128xf32>,
    } else {
    }
    %c0 = arith.constant 0 : index
    %c0_1 = arith.constant 0 : index
    %c0_2 = arith.constant 0 : index
    %3 = vector.load %arg2[%c0, %c0_1, %c0_2] : memref<1x8x128xf32, #tpu.memory_space<vmem>>, vector<1x8x128xf32>
    %4 = vector.shape_cast %3 : vector<1x8x128xf32> to vector<8x128xf32>
    %c0_3 = arith.constant 0 : index
    %c0_4 = arith.constant 0 : index
    %c0_5 = arith.constant 0 : index
    %5 = vector.load %arg3[%c0_3, %c0_4, %c0_5] : memref<1x8x128xf32, #tpu.memory_space<vmem>>, vector<1x8x128xf32>
    %6 = vector.shape_cast %5 : vector<1x8x128xf32> to vector<8x128xf32>
    %7 = arith.cmpf one, %6, %6 : vector<8x128xf32>
    %cst = arith.constant dense<true> : vector<8x128xi1>
    %8 = arith.xori %7, %cst : vector<8x128xi1>
    %cst_6 = arith.constant 0.000000e+00 : f32
    %9 = vector.broadcast %cst_6 : f32 to vector<8x128xf32>
    %10 = arith.maximumf %4, %9 : vector<8x128xf32>
    %11 = arith.mulf %4, %6 : vector<8x128xf32>
    %12 = arith.subf %10, %11 : vector<8x128xf32>
    %13 = math.absf %4 : vector<8x128xf32>
    %cst_7 = arith.constant 0.000000e+00 : f32
    %14 = vector.broadcast %cst_7 : f32 to vector<8x128xf32>
    %15 = arith.subf %14, %13 : vector<8x128xf32>
    %16 = math.exp %15 : vector<8x128xf32>
    %17 = math.log1p %16 : vector<8x128xf32>
    %18 = arith.addf %12, %17 : vector<8x128xf32>
    %cst_8 = arith.constant 0.000000e+00 : f32
    %19 = vector.broadcast %cst_8 : f32 to vector<8x128xf32>
    %20 = arith.select %8, %18, %19 : vector<8x128xi1>, vector<8x128xf32>
    %c0_9 = arith.constant 0 : index
    %c0_10 = arith.constant 0 : index
    %c0_11 = arith.constant 0 : index
    %21 = vector.load %arg4[%c0_9, %c0_10, %c0_11] : memref<1x8x128xf32, #tpu.memory_space<vmem>>, vector<1x8x128xf32>
    %22 = vector.shape_cast %21 : vector<1x8x128xf32> to vector<8x128xf32>
    %23 = vector.shape_cast %20 : vector<8x128xf32> to vector<1x8x128xf32>
    %cst_12 = arith.constant dense<0.000000e+00> : vector<8x128xf32>
    %24 = vector.multi_reduction <add>, %23, %cst_12 [0] : vector<1x8x128xf32> to vector<8x128xf32>
    %25 = arith.addf %22, %24 : vector<8x128xf32>
    %c0_13 = arith.constant 0 : index
    %c0_14 = arith.constant 0 : index
    %c0_15 = arith.constant 0 : index
    %26 = vector.load %arg4[%c0_13, %c0_14, %c0_15] : memref<1x8x128xf32, #tpu.memory_space<vmem>>, vector<1x8x128xf32>
    %27 = vector.shape_cast %26 : vector<1x8x128xf32> to vector<8x128xf32>
    %28 = vector.shape_cast %25 : vector<8x128xf32> to vector<1x8x128xf32>
    tpu.vector_store %arg4[%c0_13, %c0_14, %c0_15], %28 {strides = array<i32>} : memref<1x8x128xf32, #tpu.memory_space<vmem>>, vector<1x8x128xf32>,
    %c0_16 = arith.constant 0 : index
    %c0_17 = arith.constant 0 : index
    %c0_18 = arith.constant 0 : index
    %29 = vector.load %arg5[%c0_16, %c0_17, %c0_18] : memref<1x8x128xf32, #tpu.memory_space<vmem>>, vector<1x8x128xf32>
    %30 = vector.shape_cast %29 : vector<1x8x128xf32> to vector<8x128xf32>
    %31 = arith.extui %8 : vector<8x128xi1> to vector<8x128xi32>
    %32 = arith.sitofp %31 : vector<8x128xi32> to vector<8x128xf32>
    %33 = vector.shape_cast %32 : vector<8x128xf32> to vector<1x8x128xf32>
    %cst_19 = arith.constant dense<0.000000e+00> : vector<8x128xf32>
    %34 = vector.multi_reduction <add>, %33, %cst_19 [0] : vector<1x8x128xf32> to vector<8x128xf32>
    %35 = arith.addf %30, %34 : vector<8x128xf32>
    %c0_20 = arith.constant 0 : index
    %c0_21 = arith.constant 0 : index
    %c0_22 = arith.constant 0 : index
    %36 = vector.load %arg5[%c0_20, %c0_21, %c0_22] : memref<1x8x128xf32, #tpu.memory_space<vmem>>, vector<1x8x128xf32>
    %37 = vector.shape_cast %36 : vector<1x8x128xf32> to vector<8x128xf32>
    %38 = vector.shape_cast %35 : vector<8x128xf32> to vector<1x8x128xf32>
    tpu.vector_store %arg5[%c0_20, %c0_21, %c0_22], %38 {strides = array<i32>} : memref<1x8x128xf32, #tpu.memory_space<vmem>>, vector<1x8x128xf32>,
    return
  }
  func.func @transform_0(%arg0: i32, %arg1: i32) -> (i32, i32, i32) {
    %c0_i32 = arith.constant 0 : i32
    %c0_i32_0 = arith.constant 0 : i32
    return %arg0, %arg1, %c0_i32 : i32, i32, i32
  }
  func.func @transform_1(%arg0: i32, %arg1: i32) -> (i32, i32, i32) {
    %c0_i32 = arith.constant 0 : i32
    %c0_i32_0 = arith.constant 0 : i32
    return %arg0, %arg1, %c0_i32 : i32, i32, i32
  }
  func.func @transform_2(%arg0: i32, %arg1: i32) -> (i32, i32, i32) {
    %c0_i32 = arith.constant 0 : i32
    %c0_i32_0 = arith.constant 0 : i32
    %c0_i32_1 = arith.constant 0 : i32
    return %arg0, %c0_i32, %c0_i32_0 : i32, i32, i32
  }
  func.func @transform_3(%arg0: i32, %arg1: i32) -> (i32, i32, i32) {
    %c0_i32 = arith.constant 0 : i32
    %c0_i32_0 = arith.constant 0 : i32
    %c0_i32_1 = arith.constant 0 : i32
    return %arg0, %c0_i32, %c0_i32_0 : i32, i32, i32
  }
}

</mosaic_0001>

<bundles_post_ra>
// kernel: tpu_custom_call.1
= control target key start
LH: loop header
LB: loop body
LE: loop exit
PB: predicated region body
PF: predicated region fallthrough
CT: control target
= control target key end

     0   :  { %9 = vsyncpa [#allocation3], 0  ;;  %s296_s0 = inlined_call_operand.hbm [shape: f32[1,8,128], index: 0, kind: input, shape index: {}]   ;;  %s297_s1 = inlined_call_operand.hbm [shape: f32[1,8,128], index: 1, kind: input, shape index: {}]   ;;  %s298_s2 = inlined_call_operand.hbm [shape: f32[1,8,128], index: 2, kind: output, shape index: {0}]   ;;  %s299_s3 = inlined_call_operand.hbm [shape: f32[1,8,128], index: 3, kind: output, shape index: {1}]  }
   0x1   :  { %10 = vsyncpa [#allocation6], 0 }
   0x2   :  { %11 = vsyncpa [#allocation4], 0 }
   0x3   :  { %12 = vsyncpa [#allocation9], 0  ;;  %s214_s12 = smov [#allocation2]   ;;  %s215_s14 = smov [#allocation5]  }
   0x4   :  { %s19_s13 = sshll.u32 %s214_s12, 4  ;;  %s29_s15 = sshll.u32 %s215_s14, 4  ;;  %s20_s13 = int_to_ptr.vmem [resolvable:$true] %s19_s13  ;;  %s30_s15 = int_to_ptr.vmem [resolvable:$true] %s29_s15 }
   0x5   :  { %s118_s18 = scalar_lea.hbm %s296_s0, 128 }
   0x6   :  { %p119_p0 = scmp.ne.s32.totalorder %s296_s0, %s118_s18  ;;  %p122_p1 = scmp.lt.u32.totalorder %s118_s18, %s296_s0 }
   0x8   :  { %p124_p2 = pnand %p122_p1, %p119_p0 }
   0xa   :  { %127 = shalt.err (!%p124_p2)
}
   0xb   :  { %s128_s23 = scalar_lea.vmem %s20_s13, 128  ;;  %p133_p4 = scmp.lt.s32.totalorder %s20_s13, %s20_s13 }
   0xc   :  { %p129_p3 = scmp.ne.s32.totalorder %s20_s13, %s128_s23  ;;  %p134_p5 = scmp.lt.s32.totalorder %s128_s23, %s128_s23 }
   0xe   :  { %p135_p6 = por %p134_p5, %p133_p4 }
  0x10   :  { %p136_p7 = pnand %p135_p6, %p129_p3 }
  0x12   :  { %139 = shalt.err (!%p136_p7)
}
  0x13   :  { %22 = dma.hbm_to_vmem [thread:$0]  %s296_s0, 128, %s20_s13, [#allocation3]  }
  0x14   :  { %s140_s28 = scalar_lea.hbm %s297_s1, 128 }
  0x15   :  { %p141_p8 = scmp.ne.s32.totalorder %s297_s1, %s140_s28  ;;  %p144_p9 = scmp.lt.u32.totalorder %s140_s28, %s297_s1 }
  0x17   :  { %p146_p10 = pnand %p144_p9, %p141_p8 }
  0x19   :  { %149 = shalt.err (!%p146_p10)
}
  0x1a   :  { %s150_s6 = scalar_lea.vmem %s30_s15, 128  ;;  %p155_p12 = scmp.lt.s32.totalorder %s30_s15, %s30_s15 }
  0x1b   :  { %p151_p11 = scmp.ne.s32.totalorder %s30_s15, %s150_s6  ;;  %p156_p13 = scmp.lt.s32.totalorder %s150_s6, %s150_s6 }
  0x1d   :  { %p157_p0 = por %p156_p13, %p155_p12 }
  0x1f   :  { %p158_p1 = pnand %p157_p0, %p151_p11 }
  0x21   :  { %161 = shalt.err (!%p158_p1)
}
  0x22   :  { %32 = dma.hbm_to_vmem [thread:$0]  %s297_s1, 128, %s30_s15, [#allocation6]  }
  0x23   :  { %206 = dma.done.wait [#allocation3], 128  }
  0x24   :  { %207 = vsyncadd [#allocation3], 4294967168 }
  0x25   :  { %208 = dma.done.wait [#allocation6], 128  }
  0x26   :  { %209 = vsyncadd [#allocation6], 4294967168  ;;  %v45_v0 = vld [vmem:[#allocation2] sm:$0xff]  ;;  %v46_v1 = vld [vmem:[#allocation5] sm:$0xff]  ;;  %s216_s8 = smov [#allocation8]   ;;  %vm217_vm1 = vmmov 1  }
  0x27   :  { %vm47_vm0 = vcmp.ne.f32.partialorder %v46_v1, %v46_v1  ;;  %v52_v2 = vand.u32 2147483647, %v45_v0  ;;  %s93_s9 = sshll.u32 %s216_s8, 4  ;;  %v218_v5 = vmov 0.0   ;;  %s94_s9 = int_to_ptr.vmem [resolvable:$true] %s93_s9 }
  0x28   :  { %vm264_vm2 = vmxor %vm47_vm0, %vm217_vm1  ;;  %s162_s1 = scalar_lea.vmem %s94_s9, 128  ;;  %p167_p3 = scmp.lt.s32.totalorder %s94_s9, %s94_s9 }
  0x29   :  { %v53_v4 = vsub.f32 0.0, %v52_v2  ;;  %v107_v6 = vsel %vm264_vm2, 1.0, %v218_v5  ;;  %p163_p2 = scmp.ne.s32.totalorder %s94_s9, %s162_s1  ;;  %p168_p4 = scmp.lt.s32.totalorder %s162_s1, %s162_s1 }
  0x2a   :  { %76 = vst [vmem:[#allocation8] sm:$0xff] %v107_v6 }
  0x2b   :  { %v54_v7 = vmul.f32 1.442695, %v53_v4  ;;  %p169_p5 = por %p168_p4, %p167_p3 }
  0x2d   :  { %114 = vpow2.f32 %v54_v7  ;;  %p170_p6 = pnand %p169_p5, %p163_p2 }
  0x2f   :  { %173 = shalt.err (!%p170_p6)
}
  0x30   :  { %s174_s12 = scalar_lea.hbm %s299_s3, 128 }
  0x31   :  { %p175_p7 = scmp.ne.s32.totalorder %s299_s3, %s174_s12  ;;  %p178_p8 = scmp.lt.u32.totalorder %s174_s12, %s299_s3 }
  0x33   :  { %p180_p9 = pnand %p178_p8, %p175_p7 }
  0x35   :  { %183 = shalt.err (!%p180_p9)
}
  0x36   :  { %96 = dma.vmem_to_hbm [thread:$0]  %s94_s9, 128, %s299_s3, [#allocation9]   ;;  %v50_v12 = vmul.f32 %v46_v1, %v45_v0  ;;  %v49_v13 = vmax.f32 %v45_v0, 0.0 }
  0x37   :  { %v115_v8 = vpop.eup %114  ;;  %s219_s19 = smov [#allocation7]  }
  0x38   :  { %v56_v9 = vadd.f32 1.0, %v115_v8  ;;  %v59_v10 = vmul.f32 -0.5, %v115_v8  ;;  %v62_v14 = vand.u32 2147483647, %v115_v8  ;;  %v51_v17 = vsub.f32 %v49_v13, %v50_v12  ;;  %s83_s20 = sshll.u32 %s219_s19, 4  ;;  %s84_s20 = int_to_ptr.vmem [resolvable:$true] %s83_s20 }
  0x39   :  { %s184_s3 = scalar_lea.vmem %s84_s20, 128  ;;  %p189_p11 = scmp.lt.s32.totalorder %s84_s20, %s84_s20 }
  0x3a   :  { %116 = vlog2.f32 %v56_v9  ;;  %v60_v11 = vadd.f32 1.0, %v59_v10  ;;  %vm63_vm3 = vcmp.lt.f32.partialorder %v62_v14, 0.0004427343  ;;  %p185_p10 = scmp.ne.s32.totalorder %s84_s20, %s184_s3  ;;  %p190_p12 = scmp.lt.s32.totalorder %s184_s3, %s184_s3 }
  0x3c   :  { %v61_v15 = vmul.f32 %v115_v8, %v60_v11  ;;  %p191_p13 = por %p190_p12, %p189_p11 }
  0x3e   :  { %p192_p0 = pnand %p191_p13, %p185_p10 }
  0x44   :  { %v117_v16 = vpop.eup %116 }
  0x45   :  { %v58_v18 = vmul.f32 0.6931472, %v117_v16 }
  0x47   :  { %v64_v19 = vsel %vm63_vm3, %v61_v15, %v58_v18 }
  0x48   :  { %v65_v20 = vadd.f32 %v64_v19, %v51_v17 }
  0x4a   :  { %v66_v21 = vsel %vm264_vm2, %v65_v20, 0.0 }
  0x4b   :  { %70 = vst [vmem:[#allocation7] sm:$0xff] %v66_v21 }
  0x4c   :  { %195 = shalt.err (!%p192_p0)
}
  0x4d   :  { %s196_s23 = scalar_lea.hbm %s298_s2, 128 }
  0x4e   :  { %p197_p1 = scmp.ne.s32.totalorder %s298_s2, %s196_s23  ;;  %p200_p2 = scmp.lt.u32.totalorder %s196_s23, %s298_s2 }
  0x50   :  { %p202_p3 = pnand %p200_p2, %p197_p1 }
  0x52   :  { %205 = shalt.err (!%p202_p3)
}
  0x53   :  { %86 = dma.vmem_to_hbm [thread:$0]  %s84_s20, 128, %s298_s2, [#allocation4]  }
  0x54   :  { %210 = dma.done.wait [#allocation4], 128  }
  0x55   :  { %211 = vsyncadd [#allocation4], 4294967168 }
  0x56   :  { %212 = dma.done.wait [#allocation9], 128  }
  0x57   :  { %213 = vsyncadd [#allocation9], 4294967168 }
  0x58   :  { %103 = vsyncpa [#allocation3], 1 }
  0x59   :  { %104 = vsyncpa [#allocation6], 1 }
  0x5a   :  { %105 = vsyncpa [#allocation4], 1 }
  0x5b   :  { %106 = vsyncpa [#allocation9], 1 }

</bundles_post_ra>
